<compile_context>
chip_gen: v6e
topology: v6e:2x2x1
jax: 0.10.0
libtpu: 0.0.40
codegen_flags: <defaults>
</compile_context>

<pallas_src>
import jax
import jax.numpy as jnp
from jax.experimental import pallas as pl
from jax.experimental.pallas import tpu as pltpu

CONTENT_LAYERS = ["relu5_1"]
STYLE_LAYERS = ["relu3_1", "relu4_1", "relu5_1"]

MRF_SIZE = 5
MRF_STRIDE = 2
MRF_THRESHOLD = 0.001


# ---------------------------------------------------------------------------
# Small helpers
# ---------------------------------------------------------------------------

def _full_spec(shape):
    n = len(shape)
    return pl.BlockSpec(tuple(shape), lambda i, _n=n: (0,) * _n)


def _smem_scalar_spec():
    return pl.BlockSpec(memory_space=pltpu.MemorySpace.SMEM)


# ---------------------------------------------------------------------------
# Fused conv kernel: relu(W[Cout, 9*Cin] @ patches_T[9*Cin, H*W] + b)
# ---------------------------------------------------------------------------

def _conv_kernel(w_ref, p_ref, b_ref, o_ref):
    acc = jnp.dot(w_ref[...], p_ref[...], preferred_element_type=jnp.float32)
    o_ref[...] = jnp.maximum(acc + b_ref[...], 0.0)


def _im2col_T(x):
    """x: (C, H, W) f32 -> transposed im2col patch matrix (9*C, H*W) in bf16."""
    c, h, w = x.shape
    xp = jnp.pad(x, ((0, 0), (1, 1), (1, 1)))
    cols = [xp[:, dh:dh + h, dw:dw + w] for dh in range(3) for dw in range(3)]
    pt = jnp.stack(cols, axis=0)                       # (9, C, H, W)
    return pt.reshape(9 * c, h * w).astype(jnp.bfloat16)


def conv3x3_relu(x, w2, b):
    """x: (Cin,H,W) f32; w2: (Cout,9*Cin) bf16; b: (Cout,1) f32 -> (Cout,H,W) f32."""
    cin, h, w = x.shape
    cout, k = w2.shape
    hw = h * w
    pt = _im2col_T(x)
    # Split the lane (spatial) axis on the big layers so v7x's two TensorCores both work.
    nb = 2 if (hw % 256 == 0 and hw >= 4096) else 1
    blk = hw // nb
    out = pl.pallas_call(
        _conv_kernel,
        grid=(nb,),
        in_specs=[pl.BlockSpec((cout, k), lambda i: (0, 0)),
                  pl.BlockSpec((k, blk), lambda i: (0, i)),
                  pl.BlockSpec((cout, 1), lambda i: (0, 0))],
        out_specs=pl.BlockSpec((cout, blk), lambda i: (0, i)),
        out_shape=jax.ShapeDtypeStruct((cout, hw), jnp.float32),
        compiler_params=pltpu.CompilerParams(dimension_semantics=("parallel",)),
        cost_estimate=pl.CostEstimate(
            flops=2 * cout * k * hw,
            transcendentals=0,
            bytes_accessed=2 * (cout * k + k * hw) + 4 * (cout + cout * hw)),
    )(w2, pt, b)
    return out.reshape(cout, h, w)


# ---------------------------------------------------------------------------
# Mini VGG-style extractor (conv matmuls in Pallas; pooling / im2col are XLA glue)
# ---------------------------------------------------------------------------

_VGG_CHANNELS = [(3, 8), (8, 16), (16, 32), (32, 32), (32, 32)]


def init_vgg_params(key):
    # TODO(synk): the reference Extractor is a pretrained VGG19; weights are synthesized
    # deterministically here with reduced widths (no checkpoint load).
    params = []
    for cin, cout in _VGG_CHANNELS:
        key, kw, kb = jax.random.split(key, 3)
        w = jax.random.normal(kw, (3, 3, cin, cout), jnp.float32) / jnp.sqrt(9.0 * cin)
        b = 0.01 * jax.random.normal(kb, (cout,), jnp.float32)
        w2 = jnp.transpose(w.reshape(9 * cin, cout)).astype(jnp.bfloat16)   # (Cout, 9*Cin)
        params.append((w2, b.reshape(cout, 1)))
    return params


def maxpool2x2(x):
    c, h, w = x.shape
    return x.reshape(c, h // 2, 2, w // 2, 2).max(axis=(2, 4))


def extractor(x, params):
    """Returns relu3_1 / relu4_1 / relu5_1 features, each (C, H, W)."""
    feats = {}
    h = conv3x3_relu(x, *params[0])          # relu1_1
    h = maxpool2x2(h)
    h = conv3x3_relu(h, *params[1])          # relu2_1
    h = maxpool2x2(h)
    h = conv3x3_relu(h, *params[2])          # relu3_1
    feats["relu3_1"] = h
    h = maxpool2x2(h)
    h = conv3x3_relu(h, *params[3])          # relu4_1
    feats["relu4_1"] = h
    h = maxpool2x2(h)
    h = conv3x3_relu(h, *params[4])          # relu5_1
    feats["relu5_1"] = h
    return feats


# ---------------------------------------------------------------------------
# MRF patch extraction (XLA glue; tiny tensors)
# ---------------------------------------------------------------------------

def extract_patches(f, size=MRF_SIZE, stride=MRF_STRIDE):
    """f: (C, H, W) -> (n_patches, C*size*size)."""
    c, h, w = f.shape
    nh = (h - size) // stride + 1
    nw = (w - size) // stride + 1
    ih = (jnp.arange(nh) * stride)[:, None] + jnp.arange(size)[None, :]   # (nh, size)
    iw = (jnp.arange(nw) * stride)[:, None] + jnp.arange(size)[None, :]   # (nw, size)
    p = f[:, ih[:, None, :, None], iw[None, :, None, :]]                  # (c, nh, nw, size, size)
    p = jnp.transpose(p, (1, 2, 0, 3, 4))                                 # (nh, nw, c, size, size)
    return p.reshape(nh * nw, c * size * size)


# ---------------------------------------------------------------------------
# Fused loss kernel: content MSE + 3x MRF + TV  ->  three (1,1) SMEM scalars
# ---------------------------------------------------------------------------

def _mrf_term(xp, sT, sclamp, snormsq, thr):
    """CNNMRF nearest-patch match + squared error to matched patch (gather-free).

    xp:      (n_x, D) raw patches of current features
    sT:      (D, n_s) normalized style patches, transposed (precomputed)
    sclamp:  (1, n_s) max(||s_j||, thr)
    snormsq: (1, n_s) ||s_j||^2
    """
    n_s = sT.shape[1]
    xnormsq = jnp.sum(xp * xp, axis=1, keepdims=True)              # (n_x, 1)
    xclamp = jnp.maximum(jnp.sqrt(xnormsq), thr)                   # (n_x, 1)
    xn = xp / xclamp
    sim = jnp.dot(xn, sT, preferred_element_type=jnp.float32)      # (n_x, n_s)
    m = jnp.max(sim, axis=1, keepdims=True)
    col = jax.lax.broadcasted_iota(jnp.int32, sim.shape, 1)
    best = jnp.min(jnp.where(sim >= m, col, n_s), axis=1, keepdims=True)   # first argmax
    onehot = (col == best).astype(jnp.float32)                     # (n_x, n_s)
    sim_best = jnp.sum(onehot * sim, axis=1, keepdims=True)
    sclamp_best = jnp.sum(onehot * sclamp, axis=1, keepdims=True)
    snormsq_best = jnp.sum(onehot * snormsq, axis=1, keepdims=True)
    dot_best = sim_best * xclamp * sclamp_best                     # <xp_i, s_raw_best_i>
    return jnp.sum(xnormsq - 2.0 * dot_best + snormsq_best)        # sum_i ||xp_i - s_best_i||^2


def _loss_kernel(x_ref, f5_ref, t5_ref,
                 xp3_ref, sT3_ref, sc3_ref, sn3_ref,
                 xp4_ref, sT4_ref, sc4_ref, sn4_ref,
                 xp5_ref, sT5_ref, sc5_ref, sn5_ref,
                 closs_ref, sloss_ref, tvloss_ref):
    # content (perceptual) loss on relu5_1
    # TODO(synk): PerceptualLoss source not provided; MSE against cached content feature.
    d = f5_ref[...] - t5_ref[...]
    closs_ref[0, 0] = jnp.sum(d * d) / float(f5_ref.shape[0] * f5_ref.shape[1])

    # style (MRF) loss over relu3_1 / relu4_1 / relu5_1
    # TODO(synk): MarkovRandomFieldLoss source not provided; standard CNNMRF nearest-patch
    # formulation (normalized cross-correlation match + MSE to matched patch) is used.
    style = jnp.float32(0.0)
    for xp_ref, sT_ref, sc_ref, sn_ref in (
            (xp3_ref, sT3_ref, sc3_ref, sn3_ref),
            (xp4_ref, sT4_ref, sc4_ref, sn4_ref),
            (xp5_ref, sT5_ref, sc5_ref, sn5_ref)):
        xp = xp_ref[...]
        term = _mrf_term(xp, sT_ref[...], sc_ref[...], sn_ref[...], MRF_THRESHOLD)
        style = style + term / float(xp.shape[0] * xp.shape[1])
    sloss_ref[0, 0] = style

    # total variation loss on the optimizable image (C, H, W)
    # TODO(synk): exact TotalVariationLoss normalization not provided; mean over elements used.
    x = x_ref[...]
    dh = x[:, 1:, :] - x[:, :-1, :]
    dw = x[:, :, 1:] - x[:, :, :-1]
    tvloss_ref[0, 0] = (jnp.sum(dh * dh) + jnp.sum(dw * dw)) / float(x.size)


def fused_losses(x, f5_flat, target_flat, mrf_inputs):
    ins = [x, f5_flat, target_flat]
    for tup in mrf_inputs:
        ins.extend(tup)
    out = pl.pallas_call(
        _loss_kernel,
        grid=(1,),
        in_specs=[_full_spec(a.shape) for a in ins],
        out_specs=(_smem_scalar_spec(), _smem_scalar_spec(), _smem_scalar_spec()),
        out_shape=(jax.ShapeDtypeStruct((1, 1), jnp.float32),
                   jax.ShapeDtypeStruct((1, 1), jnp.float32),
                   jax.ShapeDtypeStruct((1, 1), jnp.float32)),
    )(*ins)
    return out[0][0, 0], out[1][0, 0], out[2][0, 0]


# ---------------------------------------------------------------------------
# Loss "module"
# ---------------------------------------------------------------------------

class PallasLoss:
    def __init__(self, content, styles, key, initial=None):
        k_params, k_init = jax.random.split(key)
        self.params = init_vgg_params(k_params)
        if initial is None:
            mean, std = 0.5, 0.001
            initial = mean + std * jax.random.normal(k_init, content.shape, jnp.float32)
        self.x = initial                                   # the optimizable "parameter"

        cf = extractor(content, self.params)
        t5 = cf[CONTENT_LAYERS[0]]
        self.content_target = t5.reshape(t5.shape[0], -1)  # (C, H*W)

        sfs = [extractor(s, self.params) for s in styles]
        self.style_bank = {}
        for n in STYLE_LAYERS:
            raw = jnp.concatenate([extract_patches(sf[n]) for sf in sfs], axis=0)   # (n_s, D)
            snormsq = jnp.sum(raw * raw, axis=1)                                    # (n_s,)
            sclamp = jnp.maximum(jnp.sqrt(snormsq), MRF_THRESHOLD)                  # (n_s,)
            sT = jnp.transpose(raw / sclamp[:, None])                               # (D, n_s), precomputed once
            self.style_bank[n] = (sT, sclamp.reshape(1, -1), snormsq.reshape(1, -1))

        @jax.jit
        def _forward(x, params, content_target, style_bank):
            f = extractor(x, params)
            f5 = f[CONTENT_LAYERS[0]]
            f5_flat = f5.reshape(f5.shape[0], -1)
            mrf_inputs = []
            for n in STYLE_LAYERS:
                xp = extract_patches(f[n])
                sT, sclamp, snormsq = style_bank[n]
                mrf_inputs.append((xp, sT, sclamp, snormsq))
            return fused_losses(x, f5_flat, content_target, mrf_inputs)

        self._forward = _forward

    def forward(self):
        return self._forward(self.x, self.params, self.content_target, self.style_bank)


if __name__ == "__main__":
    key = jax.random.PRNGKey(0)
    k_content, k_s0, k_s1, k_loss = jax.random.split(key, 4)
    # Synthetic "PIL images" already converted per to_tensor: float values in [0, 1], CHW.
    content = jax.random.uniform(k_content, (3, 80, 80), dtype=jnp.float32)
    styles = [jax.random.uniform(k_s0, (3, 80, 80), dtype=jnp.float32),
              jax.random.uniform(k_s1, (3, 96, 96), dtype=jnp.float32)]

    loss_mod = PallasLoss(content, styles, key=k_loss)
    content_loss, style_loss, tv_loss = loss_mod.forward()
    jax.block_until_ready((content_loss, style_loss, tv_loss))
    print("KERNEL_OK")
</pallas_src>

<mosaic_0001>
module attributes {stable_mosaic.version = 11 : i64} {
  func.func @_conv_kernel(%arg0: i32, %arg1: memref<8x27xbf16, #tpu.memory_space<vmem>>, %arg2: memref<27x3200xbf16, #tpu.memory_space<vmem>>, %arg3: memref<8x1xf32, #tpu.memory_space<vmem>>, %arg4: memref<8x3200xf32, #tpu.memory_space<vmem>>) attributes {dimension_semantics = [#tpu.dimension_semantics<parallel>], iteration_bounds = array<i64: 2>, scalar_prefetch = 0 : i64, scratch_operands = 0 : i64, tpu.core_type = #tpu.core_type<tc>, window_params = [{pipeline_mode = #tpu.pipeline_mode<synchronous>, transform_indices = @transform_0, window_bounds = array<i64: 8, 27>}, {transform_indices = @transform_1, window_bounds = array<i64: 27, 3200>}, {pipeline_mode = #tpu.pipeline_mode<synchronous>, transform_indices = @transform_2, window_bounds = array<i64: 8, 1>}, {transform_indices = @transform_3, window_bounds = array<i64: 8, 3200>}]} {
    %c0 = arith.constant 0 : index
    %c0_0 = arith.constant 0 : index
    %0 = vector.load %arg1[%c0, %c0_0] : memref<8x27xbf16, #tpu.memory_space<vmem>>, vector<8x27xbf16>
    %c0_1 = arith.constant 0 : index
    %c0_2 = arith.constant 0 : index
    %1 = vector.load %arg2[%c0_1, %c0_2] : memref<27x3200xbf16, #tpu.memory_space<vmem>>, vector<27x3200xbf16>
    %cst = arith.constant dense<0.000000e+00> : vector<8x3200xf32>
    %2 = tpu.matmul %0, %1, %cst {dimension_numbers = #tpu.dot_dimension_numbers<[1], [0], [0], [1], [0, 0, 1, 1], [], []>} : vector<8x27xbf16>, vector<27x3200xbf16>, vector<8x3200xf32> -> vector<8x3200xf32>
    %c0_3 = arith.constant 0 : index
    %c0_4 = arith.constant 0 : index
    %3 = vector.load %arg3[%c0_3, %c0_4] : memref<8x1xf32, #tpu.memory_space<vmem>>, vector<8x1xf32>
    %4 = vector.broadcast %3 : vector<8x1xf32> to vector<8x3200xf32>
    %5 = arith.addf %2, %4 : vector<8x3200xf32>
    %cst_5 = arith.constant 0.000000e+00 : f32
    %6 = vector.broadcast %cst_5 : f32 to vector<8x3200xf32>
    %7 = arith.maximumf %5, %6 : vector<8x3200xf32>
    %c0_6 = arith.constant 0 : index
    %c0_7 = arith.constant 0 : index
    %8 = vector.load %arg4[%c0_6, %c0_7] : memref<8x3200xf32, #tpu.memory_space<vmem>>, vector<8x3200xf32>
    tpu.vector_store %arg4[%c0_6, %c0_7], %7 {strides = array<i32>} : memref<8x3200xf32, #tpu.memory_space<vmem>>, vector<8x3200xf32>,
    return
  }
  func.func @transform_0(%arg0: i32) -> (i32, i32) {
    %c0_i32 = arith.constant 0 : i32
    %c0_i32_0 = arith.constant 0 : i32
    %c0_i32_1 = arith.constant 0 : i32
    return %c0_i32, %c0_i32_0 : i32, i32
  }
  func.func @transform_1(%arg0: i32) -> (i32, i32) {
    %c0_i32 = arith.constant 0 : i32
    %c0_i32_0 = arith.constant 0 : i32
    return %c0_i32, %arg0 : i32, i32
  }
  func.func @transform_2(%arg0: i32) -> (i32, i32) {
    %c0_i32 = arith.constant 0 : i32
    %c0_i32_0 = arith.constant 0 : i32
    %c0_i32_1 = arith.constant 0 : i32
    return %c0_i32, %c0_i32_0 : i32, i32
  }
  func.func @transform_3(%arg0: i32) -> (i32, i32) {
    %c0_i32 = arith.constant 0 : i32
    %c0_i32_0 = arith.constant 0 : i32
    return %c0_i32, %arg0 : i32, i32
  }
}

</mosaic_0001>

<bundles_post_ra>
// kernel: tpu_custom_call.1
= control target key start
LH: loop header
LB: loop body
LE: loop exit
PB: predicated region body
PF: predicated region fallthrough
CT: control target
= control target key end

     0   :  { %8 = vsyncpa [#allocation3], 0  ;;  %s1896_s0 = inlined_call_operand.vmem [shape: bf16[8,27], index: 0, kind: input, shape index: {}]   ;;  %s1897_s1 = inlined_call_operand.hbm [shape: bf16[27,6400], index: 1, kind: input, shape index: {}]   ;;  %s1898_s2 = inlined_call_operand.vmem [shape: f32[8,1], index: 2, kind: input, shape index: {}]   ;;  %s1899_s3 = inlined_call_operand.hbm [shape: f32[8,6400], index: 3, kind: output, shape index: {}]  }
   0x1   :  { %10 = vsyncpa [#allocation3 + $0x1], 0 }
   0x2   :  { %11 = vsyncpa [#allocation4], 0 }
   0x3   :  { %13 = vsyncpa [#allocation4 + $0x1], 0  ;;  %s1566_s12 = smov 0   ;;  %s1568_s13 = smov 0  }
   0x4   :  { %s1570_s14 = smov 0   ;;  %s1572_s15 = smov 0  }
   0x5 LB: > { %s1587_s16 = sadd.s32 4294967295, %s1535_s15   ;;  %s1228_s17 = sadd.s32 4294967294, %s1535_s15   ;;  %s1535_s15 = sphi %s1572_s15, %s1914_s15   ;;  %s1531_s14 = sphi %s1570_s14, %s1913_s14   ;;  %s1527_s13 = sphi %s1568_s13, %s1912_s13   ;;  %s1523_s12 = sphi %s1566_s12, %s1911_s12  }
   0x6   : > { %s1591_s18 = sadd.s32 1, %s1535_s15   ;;  %s47_s19 = sadd.s32 1, %s1531_s14 }
   0x7   : > { %s44_s20 = ssub.s32 %s1535_s15, %s1591_s18  ;;  %p54_p0 = scmp.ne.s32.totalorder %s1531_s14, %s1527_s13 }
   0x8   : > { %p45_p1 = scmp.eq.s32.totalorder %s44_s20, 0  ;;  %p55_p2 = scmp.eq.s32.totalorder %s1535_s15, 0 }
   0x9   : > { %p60_p3 = scmp.ne.s32.totalorder %s1527_s13, %s1523_s12  ;;  %p61_p4 = scmp.eq.s32.totalorder %s1587_s16, 0 }
   0xa   : > { %s1603_s21 = scalar_select %p45_p1, %s1531_s14, %s47_s19  }
   0xb   : > { %p56_p5 = por %p55_p2, %p54_p0  ;;  %p1605_p6 = por %p61_p4, %p60_p3 }
   0xc   : > { %p105_p7 = scmp.eq.s32.totalorder %s1587_s16, 1  ;;  %p111_p8 = scmp.eq.s32.totalorder %s1228_s17, 1 }
   0xd   : > { %s1902_s22 = scalar_select %p1605_p6, 1, 0 }
   0xe   : > { %p1327_p10 = scmp.lt.s32.totalorder %s1535_s15, 2  ;;  %p1612_p11 = por %p105_p7, %p54_p0 }
   0xf   : > { %p1616_p12 = por %p111_p8, %p60_p3  ;;  %s137_s25 = sand.u32 1, %s1531_s14  }
  0x10   : > { %s1903_s23 = scalar_select %p1612_p11, 1, 0 }
  0x11   : > { %s1904_s24 = scalar_select %p1616_p12, 1, 0 }
  0x12   : > { %s1299_s26 = smul.u32 1600, %s1535_s15  ;;  %p1627_p13 = pnand %p1327_p10, %p56_p5 }
  0x13   : > { %s1312_s27 = smul.u32 400, %s137_s25  ;;  %s1634_s7 = scalar_lea.sflag [#allocation3], %s137_s25 }
  0x14   : > { %s1625_s30 = scalar_lea.hbm %s1897_s1, %s1299_s26  ;;  %p1445_p2 = pneg %p1627_p13 }
  0x15   : > { %s141_s5 = scalar_lea.vmem [#allocation2], %s1312_s27  ;;  %s1443_s8 = scalar_lea.hbm %s1625_s30, 6400 }
  0x16   : > { %s148_s6 = sshll.u32 %s141_s5, 4  ;;  %p1444_p1 = scmp.ne.s32.totalorder %s1625_s30, %s1443_s8  ;;  %s1631_s6 = int_to_ptr.vmem [resolvable:$true] %s148_s6 }
  0x17   : > { %s1448_s11 = scalar_lea.hbm %s1897_s1, 12800  ;;  %p1449_p5 = scmp.lt.s32.totalorder %s1625_s30, %s1897_s1 }
  0x18   : > { %p1446_p3 = pnand %p1445_p2, %p1444_p1  ;;  %p1450_p7 = scmp.lt.s32.totalorder %s1448_s11, %s1443_s8 }
  0x1a   : > { %p1447_p4 = pneg %p1446_p3  ;;  %p1451_p8 = por %p1450_p7, %p1449_p5 }
  0x1c   : > { %p1452_p10 = pnand %p1451_p8, %p1447_p4 }
  0x1e   : > { %1455 = shalt.err (!%p1452_p10)
}
  0x1f   : > { %s1456_s20 = scalar_lea.vmem %s1631_s6, 6400  ;;  %s1537_s25 = smov [#allocation2]  }
  0x20   : > { %p1457_p9 = scmp.ne.s32.totalorder %s1631_s6, %s1456_s20  ;;  %s1461_s26 = sshll.u32 %s1537_s25, 4  ;;  %s1462_s26 = int_to_ptr.vmem [resolvable:$false] %s1461_s26 }
  0x21   : > { %s1463_s27 = scalar_lea.vmem %s1462_s26, 12800  ;;  %p1464_p3 = scmp.lt.s32.totalorder %s1631_s6, %s1462_s26 }
  0x22   : > { %p1459_p0 = pnand %p1457_p9, %p1445_p2  ;;  %p1465_p12 = scmp.lt.s32.totalorder %s1463_s27, %s1456_s20 }
  0x24   : > { %p1460_p1 = pneg %p1459_p0  ;;  %p1466_p11 = por %p1465_p12, %p1464_p3 }
  0x26   : > { %p1467_p6 = pnand %p1466_p11, %p1460_p1 }
  0x28   : > { %1470 = shalt.err (!%p1467_p6)
}
  0x29   : > { %s1538_s28 = smov 3200   ;;  %s1539_s29 = smov 1600  }
  0x2a   : > { %s1540_s5 = smov 100   ;;  %p156_p9 = scmp.lt.s32.totalorder %s1535_s15, 3 }
  0x2b   : > { %1322 = dma.hbm_to_vmem [thread:$0]  (!%p1627_p13), %s1625_s30, 6400, %s1631_s6, %s1634_s7, %s1538_s28, %s1539_s29, %s1540_s5  }
  0x2c   : > { %p1906_p0 = scmp.ge.s32.totalorder %s1535_s15, 1 }
  0x2e   : > { %p157_p2 = pnand %p1906_p0, %p156_p9 }
  0x2f   : > { %s1659_s8 = sand.u32 (!%p157_p2), 1, %s1527_s13   ;;  %p1907_p6 = scmp.ne.s32.totalorder (!%p157_p2), %s1902_s22, 0 }
  0x30   : > { %160 = sbr.rel (%p157_p2) target bundleno = 326 (0x146), region = 32  ;;  %s163_s10 = scalar_lea.sflag (!%p157_p2), [#allocation3], %s1659_s8 }
  0x31   : > { %s1313_s9 = smul.u32 (!%p157_p2), 400, %s1659_s8 }
  0x33   : > { %s1663_s11 = scalar_lea.vmem (!%p157_p2), [#allocation2], %s1313_s9 }
  0x35   : > { %1514 = dma.done.wait (%p1907_p6), %s163_s10, 6400  }
  0x36   : > { %1516 = vsyncadd (%p1907_p6), %s163_s10, 4294960896  ;;  %vm482_vm0 = vcmask 1044480   ;;  %v1541_v0 = vmov 0   ;;  %vm483_vm1 = vcmask 1045504   ;;  %v1542_v1 = vmov 65535   ;;  %s1314_s7 = smul.u32 200, %s1659_s8 }
  0x37   : > { %593 = vmatprep.mubr.bf16.mxu0 %v1541_v0  ;;  %634 = vmatprep.mubr.bf16.mxu1 %v1541_v0  ;;  %v484_v2 = vsel %vm482_vm0, 4294967295, %v1542_v1  ;;  %v1369_v4 = vld [vmem:[%s1663_s11 + $0xcc] ss:$100 sps:$4 sm:$0x3f]   ;;  %v1375_v10 = vld [vmem:[%s1663_s11 + $0x4] ss:$100 sps:$4 sm:$0xff]  }
  0x38   : > { %1368 = vset.pattern.permute.xlu0 %v1541_v0  ;;  %v1672_v3 = vsel %vm483_vm1, %v484_v2, 0  ;;  %v1371_v5 = vld [vmem:[%s1663_s11 + $0xc8] ss:$100 sps:$4 sm:$0x3f]   ;;  %v1377_v13 = vld [vmem:[%s1663_s11] ss:$100 sps:$4 sm:$0xff]  }
  0x39   : > { %v490_v6 = vand.u32 %v1369_v4, %v1672_v3  ;;  %v1372_v7 = vld [vmem:[%s1663_s11 + $0xd4] ss:$100 sps:$4 sm:$0x3f]   ;;  %v487_v9 = vand.u32 %v1371_v5, %v1672_v3  ;;  %v1378_v14 = vld [vmem:[%s1663_s11 + $0xc] ss:$100 sps:$4 sm:$0xff]   ;;  %vm478_vm2 = vcmask 220160  }
  0x3a   : > { %v1374_v8 = vld [vmem:[%s1663_s11 + $0xd0] ss:$100 sps:$4 sm:$0x3f]   ;;  %v496_v11 = vand.u32 %v1372_v7, %v1672_v3  ;;  %v1380_v15 = vld [vmem:[%s1663_s11 + $0x8] ss:$100 sps:$4 sm:$0xff]   ;;  %vm1544_vm3 = vmmov 0  }
  0x3b   : > { %573 = vmatprep.subr.bf16.mxu0 %v490_v6  ;;  %v493_v12 = vand.u32 %v1374_v8, %v1672_v3  ;;  %v1381_v16 = vld [vmem:[%s1663_s11 + $0xd8] ss:$100 sps:$4 sm:$0x3f]   ;;  %v1384_v18 = vld [vmem:[%s1663_s11 + $0xe0] ss:$100 sps:$4 sm:$0x3f]  }
  0x3c   : > { %574 = vmatpush1.bf16.msra.mxu0 %v487_v9  ;;  %614 = vmatprep.subr.bf16.mxu1 %v496_v11  ;;  %v1383_v17 = vld [vmem:[%s1663_s11 + $0xdc] ss:$100 sps:$4 sm:$0x3f]   ;;  %v1386_v19 = vld [vmem:[%s1663_s11 + $0xe4] ss:$100 sps:$4 sm:$0x3f]   ;;  %v499_v22 = vand.u32 %v1381_v16, %v1672_v3  ;;  %v505_v25 = vand.u32 %v1384_v18, %v1672_v3 }
  0x3d   : > { %575 = vmatprep.subr.bf16.mxu0 %v1375_v10  ;;  %615 = vmatpush1.bf16.msra.mxu1 %v493_v12  ;;  %v1693_v20 = vld [vmem:[%s1896_s0] sm:$0xf]  ;;  %v502_v21 = vand.u32 %v1383_v17, %v1672_v3  ;;  %v508_v23 = vand.u32 %v1386_v19, %v1672_v3  ;;  %v1389_v24 = vld [vmem:[%s1663_s11 + $0x14] ss:$100 sps:$4 sm:$0xff]   ;;  %v1401_v36 = vld [vmem:[%s1663_s11 + $0x24] ss:$100 sps:$4 sm:$0xff]  }
  0x3e   : > { %616 = vmatprep.subr.bf16.mxu1 %v1378_v14  ;;  %v1387_v26 = vld [vmem:[%s1663_s11 + $0x10] ss:$100 sps:$4 sm:$0xff]   ;;  %v1392_v27 = vld [vmem:[%s1663_s11 + $0x1c] ss:$100 sps:$4 sm:$0xff]   ;;  %v1402_v43 = vld [vmem:[%s1663_s11 + $0x28] ss:$100 sps:$4 sm:$0xff]  }
  0x3f   : > { %v1393_v28 = vld [vmem:[%s1663_s11 + $0xe8] ss:$100 sps:$4 sm:$0x3f]   ;;  %v1398_v30 = vld [vmem:[%s1663_s11 + $0xf4] ss:$100 sps:$4 sm:$0x3f]  }
  0x40   : > { %576 = vmatpush1.bf16.msra.mxu0 %v1377_v13  ;;  %v1395_v29 = vld [vmem:[%s1663_s11 + $0xec] ss:$100 sps:$4 sm:$0x3f]   ;;  %v1390_v31 = vld [vmem:[%s1663_s11 + $0x18] ss:$100 sps:$4 sm:$0xff]   ;;  %v520_v34 = vand.u32 %v1398_v30, %v1672_v3  ;;  %v511_v35 = vand.u32 %v1393_v28, %v1672_v3  ;;  %v1543_v18 = vmov 0.0  }
  0x41   : > { %617 = vmatpush1.bf16.msra.mxu1 %v1380_v15  ;;  %655 = vmatprep.subr.bf16.mxu0 %v502_v21  ;;  %v514_v32 = vand.u32 %v1395_v29, %v1672_v3  ;;  %v1396_v33 = vld [vmem:[%s1663_s11 + $0xf0] ss:$100 sps:$4 sm:$0x3f]   ;;  %v1407_v37 = vld [vmem:[%s1663_s11 + $0xfc] ss:$100 sps:$4 sm:$0x3f]  }
  0x42   : > { %696 = vmatprep.subr.bf16.mxu1 %v508_v23  ;;  %v517_v38 = vand.u32 %v1396_v33, %v1672_v3  ;;  %v1404_v39 = vld [vmem:[%s1663_s11 + $0x2c] ss:$100 sps:$4 sm:$0xff]   ;;  %v1410_v40 = vld [vmem:[%s1663_s11 + $0x104] ss:$100 sps:$4 sm:$0x3f]   ;;  %v526_v44 = vand.u32 %v1407_v37, %v1672_v3  ;;  %s1799_s17 = scalar_lea.vmem [#allocation5], %s1314_s7 }
  0x43   : > { %1283 = vmatmul.mubr.msk.bf16.vlgmr.msra.gmra.mxu0 %vm478_vm2, %v1693_v20  ;;  %v1399_v41 = vld [vmem:[%s1663_s11 + $0x20] ss:$100 sps:$4 sm:$0xff]   ;;  %v1405_v42 = vld [vmem:[%s1663_s11 + $0xf8] ss:$100 sps:$4 sm:$0x3f]   ;;  %v532_v46 = vand.u32 %v1410_v40, %v1672_v3  ;;  %s1300_s19 = smul.u32 3200, %s1587_s16 }
  0x44   : > { %656 = vmatpush1.bf16.msra.mxu0 %v499_v22  ;;  %675 = vmatprep.mubr.bf16.mxu0 %v1541_v0  ;;  %v1408_v45 = vld [vmem:[%s1663_s11 + $0x100] ss:$100 sps:$4 sm:$0x3f]   ;;  %v523_v47 = vand.u32 %v1405_v42, %v1672_v3  ;;  %v1413_v48 = vld [vmem:[%s1663_s11 + $0x34] ss:$100 sps:$4 sm:$0xff]   ;;  %s1158_s20 = sshll.u32 %s1799_s17, 4  ;;  %s1854_s20 = int_to_ptr.vmem [resolvable:$true] %s1158_s20 }
  0x45   : > { %1284 = vmatmul.mubr.msk.bf16.vlgmr.msra.gmra.mxu1 %vm478_vm2, %v1693_v20  ;;  %657 = vmatprep.subr.bf16.mxu0 %v1389_v24  ;;  %v1419_v49 = vld [vmem:[%s1663_s11 + $0x10c] ss:$100 sps:$4 sm:$0x3f]   ;;  %v529_v50 = vand.u32 %v1408_v45, %v1672_v3  ;;  %v1416_v52 = vld [vmem:[%s1663_s11 + $0x3c] ss:$100 sps:$4 sm:$0xff]   ;;  %s1852_s27 = scalar_lea.hbm %s1899_s3, %s1300_s19  ;;  %s1144_s16 = scalar_lea.sflag [#allocation4], %s1659_s8 }
  0x46   : > { %697 = vmatpush1.bf16.msra.mxu1 %v505_v25  ;;  %716 = vmatprep.mubr.bf16.mxu1 %v1541_v0  ;;  %v1411_v51 = vld [vmem:[%s1663_s11 + $0x30] ss:$100 sps:$4 sm:$0xff]   ;;  %v1417_v54 = vld [vmem:[%s1663_s11 + $0x108] ss:$100 sps:$4 sm:$0x3f]   ;;  %v538_v55 = vand.u32 %v1419_v49, %v1672_v3  ;;  %s1471_s28 = scalar_lea.vmem %s1854_s20, 3200 }
  0x47   : > { %698 = vmatprep.subr.bf16.mxu1 %v1392_v27  ;;  %v1422_v53 = vld [vmem:[%s1663_s11 + $0x114] ss:$100 sps:$4 sm:$0x3f]   ;;  %v535_v59 = vand.u32 %v1417_v54, %v1672_v3  ;;  %v1431_v60 = vld [vmem:[%s1663_s11 + $0x11c] ss:$100 sps:$4 sm:$0x3f]   ;;  %p1472_p11 = scmp.ne.s32.totalorder %s1854_s20, %s1471_s28 }
  0x48   : > { %658 = vmatpush1.bf16.msra.mxu0 %v1387_v26  ;;  %v1414_v56 = vld [vmem:[%s1663_s11 + $0x38] ss:$100 sps:$4 sm:$0xff]   ;;  %v1420_v57 = vld [vmem:[%s1663_s11 + $0x110] ss:$100 sps:$4 sm:$0x3f]   ;;  %v544_v58 = vand.u32 %v1422_v53, %v1672_v3  ;;  %v550_v6 = vand.u32 %v1431_v60, %v1672_v3  ;;  %p1908_p12 = scmp.ne.s32.totalorder %s1903_s23, 0 }
  0x49   : > { %737 = vmatprep.subr.bf16.mxu0 %v514_v32  ;;  %v1425_v61 = vld [vmem:[%s1663_s11 + $0x44] ss:$100 sps:$4 sm:$0xff]   ;;  %v541_v62 = vand.u32 %v1420_v57, %v1672_v3  ;;  %v1428_v63 = vld [vmem:[%s1663_s11 + $0x4c] ss:$100 sps:$4 sm:$0xff]   ;;  %v1437_v11 = vld [vmem:[%s1663_s11 + $0x54] ss:$100 sps:$4 sm:$0xff]  }
  0x4a   : > { %699 = vmatpush1.bf16.msra.mxu1 %v1390_v31  ;;  %v1434_v1 = vld [vmem:[%s1663_s11 + $0x124] ss:$100 sps:$4 sm:$0x3f]   ;;  %v1429_v4 = vld [vmem:[%s1663_s11 + $0x118] ss:$100 sps:$4 sm:$0x3f]   ;;  %p1473_p13 = pnand %p1472_p11, %p1908_p12 }
  0x4b   : > { %1285 = vmatmul.mubr.msk.bf16.vlgmr.msra.gmra.mxu0 %vm478_vm2, %v1693_v20  ;;  %778 = vmatprep.subr.bf16.mxu1 %v520_v34  ;;  %v1423_v2 = vld [vmem:[%s1663_s11 + $0x40] ss:$100 sps:$4 sm:$0xff]   ;;  %v1426_v7 = vld [vmem:[%s1663_s11 + $0x48] ss:$100 sps:$4 sm:$0xff]   ;;  %v556_v9 = vand.u32 %v1434_v1, %v1672_v3  ;;  %v547_v10 = vand.u32 %v1429_v4, %v1672_v3  ;;  %v1435_v14 = vld [vmem:[%s1663_s11 + $0x50] ss:$100 sps:$4 sm:$0xff]  }
  0x4c   : > { %738 = vmatpush1.bf16.msra.mxu0 %v511_v35  ;;  %757 = vmatprep.mubr.bf16.mxu0 %v1541_v0  ;;  %v245_v5 = vld [vmem:[%s1898_s2] sm:$0xff]  ;;  %v1441_v15 = vld [vmem:[%s1663_s11 + $0x128] ss:$100 sps:$4 sm:$0x3f]   ;;  %v1438_v16 = vld [vmem:[%s1663_s11 + $0x58] ss:$100 sps:$4 sm:$0xff]   ;;  %p1474_p4 = pneg %p1473_p13 }
  0x4d   : > { %1286 = vmatmul.mubr.msk.bf16.vlgmr.msra.gmra.mxu1 %vm478_vm2, %v1693_v20  ;;  %739 = vmatprep.subr.bf16.mxu0 %v1401_v36  ;;  %v1432_v8 = vld [vmem:[%s1663_s11 + $0x120] ss:$100 sps:$4 sm:$0x3f]   ;;  %v559_v17 = vand.u32 %v1441_v15, %v1672_v3  ;;  %s1545_s29 = smov [#allocation5]  }
  0x4e   : > { %779 = vmatpush1.bf16.msra.mxu1 %v517_v38  ;;  %798 = vmatprep.mubr.bf16.mxu1 %v1541_v0  ;;  %v553_v12 = vand.u32 %v1432_v8, %v1672_v3  ;;  %v1440_v13 = vld [vmem:[%s1663_s11 + $0x5c] ss:$100 sps:$4 sm:$0xff]   ;;  %s1475_s5 = sshll.u32 %s1545_s29, 4  ;;  %s1476_s5 = int_to_ptr.vmem [resolvable:$false] %s1475_s5 }
  0x4f   : > { %780 = vmatprep.subr.bf16.mxu1 %v1404_v39  ;;  %248 = vperm.xlu0 %1368, %v245_v5   ;;  %v1442_v19 = vld [vmem:[%s1663_s11 + $0x60] ss:$100 sps:$4 sm:$0xff]   ;;  %s1477_s9 = scalar_lea.vmem %s1476_s5, 6400  ;;  %p1478_p5 = scmp.lt.s32.totalorder %s1854_s20, %s1476_s5 }
  0x50   : > { %740 = vmatpush1.bf16.msra.mxu0 %v1399_v41  ;;  %p1479_p7 = scmp.lt.s32.totalorder %s1477_s9, %s1471_s28 }
  0x51   : > { %819 = vmatprep.subr.bf16.mxu0 %v526_v44 }
  0x52   : > { %781 = vmatpush1.bf16.msra.mxu1 %v1402_v43  ;;  %p1480_p8 = por %p1479_p7, %p1478_p5 }
  0x53   : > { %1287 = vmatmul.mubr.msk.bf16.vlgmr.msra.gmra.mxu0 %vm478_vm2, %v1693_v20  ;;  %860 = vmatprep.subr.bf16.mxu1 %v532_v46 }
  0x54   : > { %820 = vmatpush1.bf16.msra.mxu0 %v523_v47  ;;  %839 = vmatprep.mubr.bf16.mxu0 %v1541_v0  ;;  %p1481_p10 = pnand %p1480_p8, %p1474_p4 }
  0x55   : > { %1288 = vmatmul.mubr.msk.bf16.vlgmr.msra.gmra.mxu1 %vm478_vm2, %v1693_v20  ;;  %821 = vmatprep.subr.bf16.mxu0 %v1413_v48 }
  0x56   : > { %861 = vmatpush1.bf16.msra.mxu1 %v529_v50  ;;  %880 = vmatprep.mubr.bf16.mxu1 %v1541_v0 }
  0x57   : > { %862 = vmatprep.subr.bf16.mxu1 %v1416_v52 }
  0x58   : > { %822 = vmatpush1.bf16.msra.mxu0 %v1411_v51 }
  0x59   : > { %901 = vmatprep.subr.bf16.mxu0 %v538_v55 }
  0x5a   : > { %863 = vmatpush1.bf16.msra.mxu1 %v1414_v56 }
  0x5b   : > { %1289 = vmatmul.mubr.msk.bf16.vlgmr.msra.gmra.mxu0 %vm478_vm2, %v1693_v20  ;;  %942 = vmatprep.subr.bf16.mxu1 %v544_v58 }
  0x5c   : > { %902 = vmatpush1.bf16.msra.mxu0 %v535_v59  ;;  %921 = vmatprep.mubr.bf16.mxu0 %v1541_v0 }
  0x5d   : > { %1290 = vmatmul.mubr.msk.bf16.vlgmr.msra.gmra.mxu1 %vm478_vm2, %v1693_v20  ;;  %903 = vmatprep.subr.bf16.mxu0 %v1425_v61 }
  0x5e   : > { %943 = vmatpush1.bf16.msra.mxu1 %v541_v62  ;;  %962 = vmatprep.mubr.bf16.mxu1 %v1541_v0 }
  0x5f   : > { %944 = vmatprep.subr.bf16.mxu1 %v1428_v63 }
  0x60   : > { %904 = vmatpush1.bf16.msra.mxu0 %v1423_v2 }
  0x61   : > { %983 = vmatprep.subr.bf16.mxu0 %v550_v6 }
  0x62   : > { %945 = vmatpush1.bf16.msra.mxu1 %v1426_v7 }
  0x63   : > { %1291 = vmatmul.mubr.msk.bf16.vlgmr.msra.gmra.mxu0 %vm478_vm2, %v1693_v20  ;;  %1024 = vmatprep.subr.bf16.mxu1 %v556_v9 }
  0x64   : > { %984 = vmatpush1.bf16.msra.mxu0 %v547_v10  ;;  %1003 = vmatprep.mubr.bf16.mxu0 %v1541_v0 }
  0x65   : > { %1292 = vmatmul.mubr.msk.bf16.vlgmr.msra.gmra.mxu1 %vm478_vm2, %v1693_v20  ;;  %985 = vmatprep.subr.bf16.mxu0 %v1437_v11 }
  0x66   : > { %1025 = vmatpush1.bf16.msra.mxu1 %v553_v12  ;;  %1044 = vmatprep.mubr.bf16.mxu1 %v1541_v0 }
  0x67   : > { %1026 = vmatprep.subr.bf16.mxu1 %v1440_v13 }
  0x68   : > { %986 = vmatpush1.bf16.msra.mxu0 %v1435_v14 }
  0x69   : > { %1304 = vmatprep.subr.bf16.mxu0 %v1543_v18 }
  0x6a   : > { %1027 = vmatpush1.bf16.msra.mxu1 %v1438_v16 }
  0x6b   : > { %1293 = vmatmul.mubr.msk.bf16.vlgmr.msra.gmra.mxu0 %vm478_vm2, %v1693_v20 }
  0x6c   : > { %1305 = vmatpush3.bf16.msra.mxu0 %v559_v17  ;;  %1308 = vmatprep.mubr.msk.bf16.mxu0 %vm1544_vm3, %v1543_v18 }
  0x6d   : > { %1294 = vmatmul.mubr.msk.bf16.vlgmr.msra.gmra.mxu1 %vm478_vm2, %v1693_v20  ;;  %1306 = vmatprep.subr.bf16.mxu0 %v1543_v18 }
  0x70   : > { %1307 = vmatpush3.bf16.msra.mxu0 %v1442_v19 }
  0x73   : > { %1309 = vmatmul.mubr.msk.bf16.vlgmr.msra.gmra.mxu0 %vm478_vm2, %v1693_v20 }
  0xca   : > { %v1794_v0 = vpop.permute.xlu0 %248 }
 0x103   : > { %v595_v3 = vpop.f32.mrf.mxu0 }
 0x104   : > { %v596_v21 = vadd.f32 %v595_v3, %v1794_v0 }
 0x105   : > { %v636_v22 = vpop.f32.mrf.mxu1  ;;  %v597_v23 = vpop.f32.mrf.mxu0 }
 0x106   : > { %v1093_v24 = vmax.f32 %v596_v21, 0.0  ;;  %v637_v25 = vadd.f32 %v636_v22, %v1794_v0  ;;  %v598_v26 = vadd.f32 %v597_v23, %v1794_v0 }
 0x107   : > { %v638_v27 = vpop.f32.mrf.mxu1  ;;  %v599_v28 = vpop.f32.mrf.mxu0 }
 0x108   : > { %1118 = vst [vmem:[%s1799_s17] sm:$0xff] %v1093_v24  ;;  %v1095_v20 = vmax.f32 %v637_v25, 0.0  ;;  %v1094_v29 = vmax.f32 %v598_v26, 0.0  ;;  %v639_v30 = vadd.f32 %v638_v27, %v1794_v0 }
 0x109   : > { %v640_v31 = vpop.f32.mrf.mxu1  ;;  %v600_v32 = vpop.f32.mrf.mxu0 }
 0x10a   : > { %1120 = vst [vmem:[%s1799_s17 + $0x10] sm:$0xff] %v1095_v20  ;;  %1119 = vst [vmem:[%s1799_s17 + $0x8] sm:$0xff] %v1094_v29  ;;  %v1096_v33 = vmax.f32 %v639_v30, 0.0 }
 0x10b   : > { %v641_v34 = vpop.f32.mrf.mxu1  ;;  %v677_v35 = vpop.f32.mrf.mxu0 }
 0x10c   : > { %1121 = vst [vmem:[%s1799_s17 + $0x18] sm:$0xff] %v1096_v33  ;;  %v678_v36 = vadd.f32 %v677_v35, %v1794_v0 }
 0x10d   : > { %v718_v37 = vpop.f32.mrf.mxu1  ;;  %v679_v38 = vpop.f32.mrf.mxu0 }
 0x10e   : > { %v1097_v39 = vmax.f32 %v678_v36, 0.0  ;;  %v719_v40 = vadd.f32 %v718_v37, %v1794_v0  ;;  %v680_v41 = vadd.f32 %v679_v38, %v1794_v0 }
 0x10f   : > { %v720_v42 = vpop.f32.mrf.mxu1  ;;  %v681_v43 = vpop.f32.mrf.mxu0 }
 0x110   : > { %1122 = vst [vmem:[%s1799_s17 + $0x20] sm:$0xff] %v1097_v39  ;;  %v1099_v44 = vmax.f32 %v719_v40, 0.0  ;;  %v1098_v45 = vmax.f32 %v680_v41, 0.0  ;;  %v721_v46 = vadd.f32 %v720_v42, %v1794_v0 }
 0x111   : > { %v722_v47 = vpop.f32.mrf.mxu1  ;;  %v682_v48 = vpop.f32.mrf.mxu0 }
 0x112   : > { %1124 = vst [vmem:[%s1799_s17 + $0x30] sm:$0xff] %v1099_v44  ;;  %1123 = vst [vmem:[%s1799_s17 + $0x28] sm:$0xff] %v1098_v45  ;;  %v1100_v49 = vmax.f32 %v721_v46, 0.0 }
 0x113   : > { %v723_v50 = vpop.f32.mrf.mxu1  ;;  %v759_v51 = vpop.f32.mrf.mxu0 }
 0x114   : > { %1125 = vst [vmem:[%s1799_s17 + $0x38] sm:$0xff] %v1100_v49  ;;  %v760_v52 = vadd.f32 %v759_v51, %v1794_v0 }
 0x115   : > { %v800_v53 = vpop.f32.mrf.mxu1  ;;  %v761_v54 = vpop.f32.mrf.mxu0 }
 0x116   : > { %v1101_v55 = vmax.f32 %v760_v52, 0.0  ;;  %v801_v56 = vadd.f32 %v800_v53, %v1794_v0  ;;  %v762_v57 = vadd.f32 %v761_v54, %v1794_v0 }
 0x117   : > { %v802_v58 = vpop.f32.mrf.mxu1  ;;  %v763_v59 = vpop.f32.mrf.mxu0 }
 0x118   : > { %1126 = vst [vmem:[%s1799_s17 + $0x40] sm:$0xff] %v1101_v55  ;;  %v1103_v60 = vmax.f32 %v801_v56, 0.0  ;;  %v1102_v61 = vmax.f32 %v762_v57, 0.0  ;;  %v803_v62 = vadd.f32 %v802_v58, %v1794_v0 }
 0x119   : > { %v804_v63 = vpop.f32.mrf.mxu1  ;;  %v764_v1 = vpop.f32.mrf.mxu0 }
 0x11a   : > { %1128 = vst [vmem:[%s1799_s17 + $0x50] sm:$0xff] %v1103_v60  ;;  %1127 = vst [vmem:[%s1799_s17 + $0x48] sm:$0xff] %v1102_v61  ;;  %v1104_v2 = vmax.f32 %v803_v62, 0.0 }
 0x11b   : > { %v805_v4 = vpop.f32.mrf.mxu1  ;;  %v841_v5 = vpop.f32.mrf.mxu0 }
 0x11c   : > { %1129 = vst [vmem:[%s1799_s17 + $0x58] sm:$0xff] %v1104_v2  ;;  %v842_v6 = vadd.f32 %v841_v5, %v1794_v0 }
 0x11d   : > { %v882_v7 = vpop.f32.mrf.mxu1  ;;  %v843_v8 = vpop.f32.mrf.mxu0 }
 0x11e   : > { %v1105_v9 = vmax.f32 %v842_v6, 0.0  ;;  %v883_v10 = vadd.f32 %v882_v7, %v1794_v0  ;;  %v844_v11 = vadd.f32 %v843_v8, %v1794_v0 }
 0x11f   : > { %v884_v12 = vpop.f32.mrf.mxu1  ;;  %v845_v13 = vpop.f32.mrf.mxu0 }
 0x120   : > { %1130 = vst [vmem:[%s1799_s17 + $0x60] sm:$0xff] %v1105_v9  ;;  %v1107_v14 = vmax.f32 %v883_v10, 0.0  ;;  %v1106_v15 = vmax.f32 %v844_v11, 0.0  ;;  %v885_v16 = vadd.f32 %v884_v12, %v1794_v0 }
 0x121   : > { %v886_v17 = vpop.f32.mrf.mxu1  ;;  %v846_v18 = vpop.f32.mrf.mxu0 }
 0x122   : > { %1132 = vst [vmem:[%s1799_s17 + $0x70] sm:$0xff] %v1107_v14  ;;  %1131 = vst [vmem:[%s1799_s17 + $0x68] sm:$0xff] %v1106_v15  ;;  %v1108_v19 = vmax.f32 %v885_v16, 0.0 }
 0x123   : > { %v887_v3 = vpop.f32.mrf.mxu1  ;;  %v923_v21 = vpop.f32.mrf.mxu0 }
 0x124   : > { %1133 = vst [vmem:[%s1799_s17 + $0x78] sm:$0xff] %v1108_v19  ;;  %v924_v22 = vadd.f32 %v923_v21, %v1794_v0 }
 0x125   : > { %v964_v23 = vpop.f32.mrf.mxu1  ;;  %v925_v24 = vpop.f32.mrf.mxu0 }
 0x126   : > { %v1109_v25 = vmax.f32 %v924_v22, 0.0  ;;  %v965_v26 = vadd.f32 %v964_v23, %v1794_v0  ;;  %v926_v27 = vadd.f32 %v925_v24, %v1794_v0 }
 0x127   : > { %v966_v28 = vpop.f32.mrf.mxu1  ;;  %v927_v20 = vpop.f32.mrf.mxu0 }
 0x128   : > { %1134 = vst [vmem:[%s1799_s17 + $0x80] sm:$0xff] %v1109_v25  ;;  %v1111_v29 = vmax.f32 %v965_v26, 0.0  ;;  %v1110_v30 = vmax.f32 %v926_v27, 0.0  ;;  %v967_v31 = vadd.f32 %v966_v28, %v1794_v0 }
 0x129   : > { %v968_v32 = vpop.f32.mrf.mxu1  ;;  %v928_v33 = vpop.f32.mrf.mxu0 }
 0x12a   : > { %1136 = vst [vmem:[%s1799_s17 + $0x90] sm:$0xff] %v1111_v29  ;;  %1135 = vst [vmem:[%s1799_s17 + $0x88] sm:$0xff] %v1110_v30  ;;  %v1112_v34 = vmax.f32 %v967_v31, 0.0 }
 0x12b   : > { %v969_v35 = vpop.f32.mrf.mxu1  ;;  %v1005_v36 = vpop.f32.mrf.mxu0 }
 0x12c   : > { %1137 = vst [vmem:[%s1799_s17 + $0x98] sm:$0xff] %v1112_v34  ;;  %v1006_v37 = vadd.f32 %v1005_v36, %v1794_v0 }
 0x12d   : > { %v1046_v38 = vpop.f32.mrf.mxu1  ;;  %v1007_v39 = vpop.f32.mrf.mxu0 }
 0x12e   : > { %v1113_v40 = vmax.f32 %v1006_v37, 0.0  ;;  %v1047_v41 = vadd.f32 %v1046_v38, %v1794_v0  ;;  %v1008_v42 = vadd.f32 %v1007_v39, %v1794_v0 }
 0x12f   : > { %v1048_v43 = vpop.f32.mrf.mxu1  ;;  %v1009_v44 = vpop.f32.mrf.mxu0 }
 0x130   : > { %1138 = vst [vmem:[%s1799_s17 + $0xa0] sm:$0xff] %v1113_v40  ;;  %v1115_v45 = vmax.f32 %v1047_v41, 0.0  ;;  %v1114_v46 = vmax.f32 %v1008_v42, 0.0  ;;  %v1049_v47 = vadd.f32 %v1048_v43, %v1794_v0 }
 0x131   : > { %v1050_v48 = vpop.f32.mrf.mxu1  ;;  %v1010_v49 = vpop.f32.mrf.mxu0 }
 0x132   : > { %1140 = vst [vmem:[%s1799_s17 + $0xb0] sm:$0xff] %v1115_v45  ;;  %1139 = vst [vmem:[%s1799_s17 + $0xa8] sm:$0xff] %v1114_v46  ;;  %v1116_v50 = vmax.f32 %v1049_v47, 0.0 }
 0x133   : > { %v1051_v51 = vpop.f32.mrf.mxu1  ;;  %v1087_v52 = vpop.f32.mrf.mxu0 }
 0x134   : > { %1141 = vst [vmem:[%s1799_s17 + $0xb8] sm:$0xff] %v1116_v50  ;;  %v1088_v53 = vadd.f32 %v1087_v52, %v1794_v0 }
 0x135   : > { %v1310_v54 = vpop.f32.mrf.mxu0 }
 0x136   : > { %v1117_v55 = vmax.f32 %v1088_v53, 0.0 }
 0x137   : > { %v1090_v56 = vpop.f32.mrf.mxu0 }
 0x138   : > { %1142 = vst [vmem:[%s1799_s17 + $0xc0] sm:$0xff] %v1117_v55 }
 0x139   : > { %v1311_v57 = vpop.f32.mrf.mxu0 }
 0x13a   : > { %1484 = shalt.err (!%p1481_p10)
}
 0x13b   : > { %s1485_s10 = scalar_lea.hbm %s1852_s27, 3200  ;;  %s1489_s22 = scalar_lea.hbm %s1899_s3, 6400 }
 0x13c   : > { %p1486_p1 = scmp.ne.s32.totalorder %s1852_s27, %s1485_s10  ;;  %p1490_p0 = scmp.lt.s32.totalorder %s1852_s27, %s1899_s3 }
 0x13d   : > { %p1491_p2 = scmp.lt.s32.totalorder %s1489_s22, %s1485_s10 }
 0x13e   : > { %p1487_p3 = pnand %p1486_p1, %p1908_p12 }
 0x13f   : > { %p1492_p6 = por %p1491_p2, %p1490_p0 }
 0x140   : > { %p1488_p9 = pneg %p1487_p3 }
 0x142   : > { %p1493_p11 = pnand %p1492_p6, %p1488_p9 }
 0x144   : > { %1496 = shalt.err (!%p1493_p11)
}
 0x145   : > { %1317 = dma.vmem_to_hbm [thread:$0]  (%p1908_p12), %s1854_s20, 3200, %s1852_s27, %s1144_s16  }
 0x146 PF: > { %s1170_s6 = sand.u32 1, %s1523_s12   ;;  %p1909_p13 = scmp.ne.s32.totalorder %s1904_s24, 0 }
 0x147   : > { %p1910_p4 = scmp.ge.s32.totalorder %s1535_s15, 2  ;;  %s1171_s7 = scalar_lea.sflag [#allocation4], %s1170_s6 }
 0x149   : > { %p1324_p5 = pnand %p1910_p4, %p1909_p13 }
 0x14b   : > { %p1325_p7 = pneg %p1324_p5 }
 0x14d   : > { %1518 = dma.done.wait (%p1325_p7), %s1171_s7, 3200  }
 0x14e   : > { %1520 = vsyncadd (%p1325_p7), %s1171_s7, 4294964096  ;;  %p16_p8 = scmp.ge.s32.totalorder %s1591_s18, 4   ;;  %s1911_s12 = smov %s1527_s13 }
 0x14f   : > { %s1912_s13 = smov %s1531_s14  ;;  %s1913_s14 = smov %s1603_s21 }
 0x150   : > { %s1914_s15 = smov %s1591_s18  ;;  %18 = sbr.rel (!%p16_p8) target bundleno = 5 (0x5), region = 77 }
 0x155   :  { %1176 = vsyncpa [#allocation3], 1 }
 0x156   :  { %1178 = vsyncpa [#allocation3 + $0x1], 1 }
 0x157   :  { %1179 = vsyncpa [#allocation4], 1 }
 0x158   :  { %1181 = vsyncpa [#allocation4 + $0x1], 1 }

</bundles_post_ra>
